<compile_context>
chip_gen: v6e
topology: v6e:2x2x1
jax: 0.10.0
libtpu: 0.0.40
codegen_flags: <defaults>
</compile_context>

<pallas_src>
import functools
import math

import jax
import jax.numpy as jnp
from jax import lax
from jax.experimental import pallas as pl
from jax.experimental.pallas import tpu as pltpu


# --------------------------- generation-aware sizing --------------------------

def _vmem_limit_bytes():
    """Scoped-VMEM budget: ~3/4 of physical, capped at 100 MiB.
    v5e/v6e (128 MiB) -> 96 MiB, v7x (64 MiB) -> 48 MiB; conservative 48 MiB
    fallback if the hardware query is unavailable."""
    cap = 64 * 1024 * 1024
    try:
        cap = int(pltpu.get_tpu_info().vmem_capacity_bytes)
    except Exception:
        pass
    return min(cap * 3 // 4, 100 * 1024 * 1024)


_VMEM_LIMIT = _vmem_limit_bytes()
_TIME_TILE_CAP = 2048 if _VMEM_LIMIT >= 80 * 1024 * 1024 else 1024


def _time_tiles(T):
    """(tile, n_tiles) for the time axis of the projection kernels.  The tile
    is a multiple of 8; ragged last tiles are handled by Pallas edge masking."""
    if T <= _TIME_TILE_CAP:
        return T, 1
    return _TIME_TILE_CAP, pl.cdiv(T, _TIME_TILE_CAP)


def _heads_per_group(n_head, d_k):
    """Smallest divisor of n_head giving a lane-dense (multiple-of-128) head
    group; falls back to all heads (block == full lane extent)."""
    for hpg in range(1, n_head + 1):
        if n_head % hpg == 0 and (hpg * d_k) % 128 == 0:
            return hpg
    return n_head


# ----------------------------- projection kernels -----------------------------

def _qkv_self_kernel(x_ref, wt_ref, b_ref, q_ref, k_ref, v_ref, *, n_attn):
    # Single fused (tT, K) @ (K, 3N) MXU pass; result sliced into q/k/v.
    x = x_ref[...].astype(wt_ref.dtype)
    y = jnp.dot(x, wt_ref[...], preferred_element_type=jnp.float32) + b_ref[...]
    y = y.astype(q_ref.dtype)
    q_ref[...] = y[:, :n_attn]
    k_ref[...] = y[:, n_attn:2 * n_attn]
    v_ref[...] = y[:, 2 * n_attn:]


def _qkv_cross_kernel(xq_ref, xk_ref, xv_ref, wt_ref, b_ref,
                      q_ref, k_ref, v_ref):
    for idx, (x_ref, o_ref) in enumerate(
            ((xq_ref, q_ref), (xk_ref, k_ref), (xv_ref, v_ref))):
        x = x_ref[...].astype(wt_ref.dtype)
        y = jnp.dot(x, wt_ref[idx], preferred_element_type=jnp.float32) + b_ref[idx]
        o_ref[...] = y.astype(o_ref.dtype)


def qkv_projection(xq, xk, xv, w_cat_t, b_cat, w_stack_t, b_stack, *,
                   n_attn, compute_dtype, self_attention):
    """q/k/v projections.  Weights are pre-cast to compute_dtype (bf16 in
    production) outside the kernel; q/k/v are emitted in compute_dtype so the
    HBM-bound attention core reads half the bytes."""
    B, T, K = xq.shape
    N = n_attn
    tT, nT = _time_tiles(T)
    spec_x = pl.BlockSpec((None, tT, K), lambda b, t: (b, t, 0))
    spec_o = pl.BlockSpec((None, tT, N), lambda b, t: (b, t, 0))
    out_sd = jax.ShapeDtypeStruct((B, T, N), compute_dtype)
    cparams = pltpu.CompilerParams(
        dimension_semantics=("parallel", "parallel"),
        vmem_limit_bytes=_VMEM_LIMIT)
    if self_attention:
        # One lane-dense 3N-wide matmul per tile; the shared input is DMA'd once.
        return pl.pallas_call(
            functools.partial(_qkv_self_kernel, n_attn=N),
            out_shape=(out_sd, out_sd, out_sd),
            grid=(B, nT),
            in_specs=[spec_x,
                      pl.BlockSpec((K, 3 * N), lambda b, t: (0, 0)),
                      pl.BlockSpec((1, 3 * N), lambda b, t: (0, 0))],
            out_specs=(spec_o, spec_o, spec_o),
            compiler_params=cparams,
        )(xq, w_cat_t.astype(compute_dtype), b_cat)
    return pl.pallas_call(
        _qkv_cross_kernel,
        out_shape=(out_sd, out_sd, out_sd),
        grid=(B, nT),
        in_specs=[spec_x, spec_x, spec_x,
                  pl.BlockSpec((3, K, N), lambda b, t: (0, 0, 0)),
                  pl.BlockSpec((3, 1, N), lambda b, t: (0, 0, 0))],
        out_specs=(spec_o, spec_o, spec_o),
        compiler_params=cparams,
    )(xq, xk, xv, w_stack_t.astype(compute_dtype), b_stack)


def _linear_kernel(x_ref, wt_ref, b_ref, o_ref):
    x = x_ref[...].astype(wt_ref.dtype)
    y = jnp.dot(x, wt_ref[...], preferred_element_type=jnp.float32) + b_ref[...]
    o_ref[...] = y.astype(o_ref.dtype)


def pallas_linear(x, wt, b2, *, out_dtype):
    """y = x @ wt + b.  x: (B, T, K), wt: (K, N) pre-cast, b2: (1, N) f32."""
    B, T, K = x.shape
    N = wt.shape[1]
    tT, nT = _time_tiles(T)
    return pl.pallas_call(
        _linear_kernel,
        out_shape=jax.ShapeDtypeStruct((B, T, N), out_dtype),
        grid=(B, nT),
        in_specs=[
            pl.BlockSpec((None, tT, K), lambda b, t: (b, t, 0)),
            pl.BlockSpec((K, N), lambda b, t: (0, 0)),
            pl.BlockSpec((1, N), lambda b, t: (0, 0)),
        ],
        out_specs=pl.BlockSpec((None, tT, N), lambda b, t: (b, t, 0)),
        compiler_params=pltpu.CompilerParams(
            dimension_semantics=("parallel", "parallel"),
            vmem_limit_bytes=_VMEM_LIMIT),
    )(x, wt, b2)


# ----------------------------- attention core kernel --------------------------

def _nt(a, b):
    # a @ b.T via dot_general (contract last dims); no transpose materialized.
    return lax.dot_general(a, b, (((1,), (1,)), ((), ())),
                           preferred_element_type=jnp.float32)


def _softmax(x, axis, approx):
    m = jnp.max(x, axis=axis, keepdims=True)
    e = jnp.exp(x - m)
    s = jnp.sum(e, axis=axis, keepdims=True)
    if approx:
        return e * pl.reciprocal(s, approx=True)
    return e / s


def _nystrom_kernel(q_ref, k_ref, v_ref, p_ref, wl_ref, o_ref, *,
                    heads, d_k, d_kernel, n_iter=6,
                    compute_dtype=jnp.bfloat16):
    # One (batch, head-group) per grid step.
    # Refs: q/k/v/o (T, G), P (L, T), wl (d_kernel, G), with G = heads * d_k.
    T, G = q_ref.shape
    L = p_ref.shape[0]
    cdt = compute_dtype
    f32 = jnp.float32
    approx = cdt != jnp.float32            # exact divides on the f32 parity path
    inv_sqrt_dk = 1.0 / math.sqrt(d_k)     # == (d_k**-0.25)**2, folded into logits

    # ---- depthwise conv over time: d_kernel shifted adds (VPU/XLU), f32 ----
    # Done first so the full-width f32 copy of v is dead before the head loop.
    v_f32 = v_ref[...].astype(f32)
    wl = wl_ref[...].astype(f32)                              # (d_kernel, G)
    t_idx = lax.broadcasted_iota(jnp.int32, (T, 1), 0)        # (T, 1) mask base
    pad = d_kernel // 2
    conv = jnp.zeros((T, G), f32)
    for i in range(d_kernel):
        s = i - pad                                   # out[t] += w[i] * v[t + s]
        if s == 0:
            shifted = v_f32
        else:
            shifted = pltpu.roll(v_f32, shift=(-s) % T, axis=0)
            shifted = jnp.where((t_idx + s >= 0) & (t_idx + s < T), shifted, 0.0)
        conv = conv + shifted * wl[i:i + 1, :]
    del v_f32

    # ---- landmark pooling for all heads in the group (f32 accumulation) ----
    q_c = q_ref[...].astype(cdt)
    k_c = k_ref[...].astype(cdt)
    P_c = p_ref[...].astype(cdt)
    q_land = jnp.dot(P_c, q_c, preferred_element_type=f32)    # (L, G) f32
    k_land = jnp.dot(P_c, k_c, preferred_element_type=f32)
    q_land_c = q_land.astype(cdt)
    k_land_c = k_land.astype(cdt)

    # Scaled identities for Newton-Schulz, hoisted out of the unrolled loops.
    ri = lax.broadcasted_iota(jnp.int32, (L, L), 0)
    ci = lax.broadcasted_iota(jnp.int32, (L, L), 1)
    ident = (ri == ci).astype(f32)
    i13, i15, i7 = 13.0 * ident, 15.0 * ident, 7.0 * ident

    for h in range(heads):                          # static unroll over heads
        sl = slice(h * d_k, (h + 1) * d_k)
        qh, kh = q_c[:, sl], k_c[:, sl]
        vh = v_ref[:, sl].astype(cdt)
        qlh_f, klh_f = q_land[:, sl], k_land[:, sl]           # f32 (NS path)
        qlh_c, klh_c = q_land_c[:, sl], k_land_c[:, sl]

        k1 = _softmax(_nt(qh, klh_c) * inv_sqrt_dk, -1, approx)   # (T, L)
        k3 = _softmax(_nt(qlh_c, kh) * inv_sqrt_dk, -1, approx)   # (L, T)
        # (L, L) logits kept in f32: the pseudo-inverse amplifies perturbations.
        l2 = _nt(qlh_f, klh_f) * inv_sqrt_dk                      # (L, L)
        l2t = _nt(klh_f, qlh_f) * inv_sqrt_dk                     # == l2.T
        k2 = _softmax(l2, -1, approx)
        k2_t = _softmax(l2t, 0, approx)                           # == k2.T

        # Newton-Schulz pseudo-inverse of k2 (f32 throughout).
        denom = jnp.max(jnp.sum(k2, axis=0, keepdims=True),
                        axis=-1, keepdims=True)                   # (1, 1)
        if approx:
            V = k2_t * pl.reciprocal(denom, approx=True)
        else:
            V = k2_t / denom
        for _ in range(n_iter):
            KV = jnp.dot(k2, V, preferred_element_type=f32)
            inner = i13 - jnp.dot(
                KV, i15 - jnp.dot(KV, i7 - KV, preferred_element_type=f32),
                preferred_element_type=f32)
            V = jnp.dot(0.25 * V, inner, preferred_element_type=f32)

        right = jnp.dot(k3.astype(cdt), vh,
                        preferred_element_type=f32)               # (L, d_k)
        left = jnp.dot(k1.astype(cdt), V.astype(cdt),
                       preferred_element_type=f32)                # (T, L)
        attn_h = jnp.dot(left.astype(cdt), right.astype(cdt),
                         preferred_element_type=f32)              # (T, d_k)
        # Direct lane-slice store: no (T, G) concat, no all-heads liveness.
        o_ref[:, sl] = (attn_h + conv[:, sl]).astype(o_ref.dtype)


def nystrom_attention_core(q, k, v, P, wconv_lanes, *, n_head, d_kernel,
                           compute_dtype=jnp.bfloat16):
    B, T, HD = q.shape
    L = P.shape[0]
    d_k = HD // n_head
    hpg = _heads_per_group(n_head, d_k)
    G = hpg * d_k
    n_hg = n_head // hpg
    kern = functools.partial(_nystrom_kernel, heads=hpg, d_k=d_k,
                             d_kernel=d_kernel, compute_dtype=compute_dtype)
    return pl.pallas_call(
        kern,
        out_shape=jax.ShapeDtypeStruct((B, T, HD), compute_dtype),
        grid=(B, n_hg),
        in_specs=[
            pl.BlockSpec((None, T, G), lambda b, g: (b, 0, g)),
            pl.BlockSpec((None, T, G), lambda b, g: (b, 0, g)),
            pl.BlockSpec((None, T, G), lambda b, g: (b, 0, g)),
            pl.BlockSpec((L, T), lambda b, g: (0, 0)),
            pl.BlockSpec((d_kernel, G), lambda b, g: (0, g)),
        ],
        out_specs=pl.BlockSpec((None, T, G), lambda b, g: (b, 0, g)),
        compiler_params=pltpu.CompilerParams(
            dimension_semantics=("parallel", "parallel"),
            vmem_limit_bytes=_VMEM_LIMIT),
    )(q, k, v, P, wconv_lanes)


# ----------------------------- plain-JAX glue ---------------------------------

def make_landmark_matrix(T, L, dtype=jnp.float32):
    """P (L, T) such that P @ x == mean of the Nystrom landmark segments of
    concat(x, x, x)[: (T//L + 1) * L]."""
    m = T // L + 1
    total = m * L
    assert total <= 3 * T, "landmark construction requires (T//L+1)*L <= 3*T"
    pos = jnp.arange(3 * T)
    valid = (pos < total).astype(dtype)
    land = pos // m
    orig = pos % T
    assign = (land[:, None] == jnp.arange(L)[None, :]).astype(dtype) * valid[:, None]
    gather = (orig[:, None] == jnp.arange(T)[None, :]).astype(dtype)
    return (assign.T @ gather) / float(m)


class NystromAttentionPallas:
    def __init__(self, n_head, n_feat, n_landmarks, n_attn, d_kernel, key):
        assert n_attn % n_head == 0
        assert d_kernel % 2 == 1, "Conv2d padding only shape-preserving for odd d_kernel"
        self.h = n_head
        self.d_k = n_attn // n_head
        self.n_attn = n_attn
        self.n_landmarks = n_landmarks
        self.d_kernel = d_kernel
        ks = jax.random.split(key, 9)

        def lin(kw, kb, fan_out, fan_in):
            bound = 1.0 / math.sqrt(fan_in)
            w = jax.random.uniform(kw, (fan_out, fan_in), jnp.float32, -bound, bound)
            b = jax.random.uniform(kb, (fan_out,), jnp.float32, -bound, bound)
            return w, b

        self.Wq, self.bq = lin(ks[0], ks[1], n_attn, n_feat)
        self.Wk, self.bk = lin(ks[2], ks[3], n_attn, n_feat)
        self.Wv, self.bv = lin(ks[4], ks[5], n_attn, n_feat)
        self.Wo, self.bo = lin(ks[6], ks[7], n_feat, n_attn)
        # nn.Conv2d(h, h, (d_kernel, 1), groups=h, bias=False) weight (h,1,dk,1) -> (h, dk)
        cb = 1.0 / math.sqrt(d_kernel)
        self.Wconv = jax.random.uniform(ks[8], (n_head, d_kernel), jnp.float32, -cb, cb)

        # Pre-packed parameters for the fused kernels (cast to compute_dtype at call
        # time so the per-step weight DMA is halved in the bf16 production path).
        self.Wqkv_t = jnp.stack([self.Wq.T, self.Wk.T, self.Wv.T], axis=0)        # (3, n_feat, n_attn)
        self.bqkv = jnp.stack([self.bq, self.bk, self.bv], axis=0)[:, None, :]    # (3, 1, n_attn) f32
        self.Wqkv_cat_t = jnp.concatenate([self.Wq.T, self.Wk.T, self.Wv.T], 1)   # (n_feat, 3*n_attn)
        self.bqkv_cat = jnp.concatenate([self.bq, self.bk, self.bv], 0)[None, :]  # (1, 3*n_attn) f32
        self.Wo_t = self.Wo.T                                                     # (n_attn, n_feat)
        self.bo2 = self.bo[None, :]                                               # (1, n_feat) f32
        # Conv weights broadcast over lanes: (d_kernel, h*d_k), [i, h*d_k+d] = Wconv[h, i]
        self.Wconv_lanes = jnp.repeat(self.Wconv.T, self.d_k, axis=1)

    def __call__(self, query, key, value, mask=None, *,
                 compute_dtype=jnp.bfloat16, self_attention=None):
        # TODO(synk): mask is accepted for API parity only (the reference forward
        # ignores it), and the `self.attn` side-output matrix is not materialized.
        assert query.shape == key.shape == value.shape
        if self_attention is None:
            self_attention = (query is key) and (key is value)
        B, T, _ = query.shape
        q, k, v = qkv_projection(
            query, key, value,
            self.Wqkv_cat_t, self.bqkv_cat, self.Wqkv_t, self.bqkv,
            n_attn=self.n_attn, compute_dtype=compute_dtype,
            self_attention=self_attention)
        P = make_landmark_matrix(T, self.n_landmarks).astype(compute_dtype)
        x = nystrom_attention_core(q, k, v, P, self.Wconv_lanes,
                                   n_head=self.h, d_kernel=self.d_kernel,
                                   compute_dtype=compute_dtype)
        return pallas_linear(x, self.Wo_t.astype(compute_dtype), self.bo2,
                             out_dtype=query.dtype)


def reference_forward(mod, query, key, value):
    """Pure-JAX transcription of the PyTorch forward (for verification)."""
    B, T, _ = query.shape
    h, dk, L, dker = mod.h, mod.d_k, mod.n_landmarks, mod.d_kernel

    def lin(x, w, b):
        return x @ w.T + b

    q = lin(query, mod.Wq, mod.bq).reshape(B, T, h, dk).transpose(0, 2, 1, 3)
    k = lin(key, mod.Wk, mod.bk).reshape(B, T, h, dk).transpose(0, 2, 1, 3)
    v = lin(value, mod.Wv, mod.bv).reshape(B, T, h, dk).transpose(0, 2, 1, 3)
    sc = 1.0 / math.sqrt(math.sqrt(dk))
    q = q * sc
    k = k * sc
    m = T // L + 1
    q_rep = jnp.concatenate([q, q, q], axis=-2)[:, :, : m * L, :]
    k_rep = jnp.concatenate([k, k, k], axis=-2)[:, :, : m * L, :]
    q_land = q_rep.reshape(B, h, L, m, dk).mean(axis=-2)
    k_land = k_rep.reshape(B, h, L, m, dk).mean(axis=-2)
    k1 = jax.nn.softmax(q @ jnp.swapaxes(k_land, -1, -2), axis=-1)
    k2 = jax.nn.softmax(q_land @ jnp.swapaxes(k_land, -1, -2), axis=-1)
    k3 = jax.nn.softmax(q_land @ jnp.swapaxes(k, -1, -2), axis=-1)
    I = jnp.eye(L, dtype=jnp.float32)
    K = k2
    V = (1.0 / jnp.max(jnp.sum(K, axis=-2), axis=-1))[:, :, None, None] \
        * jnp.swapaxes(K, -1, -2)
    for _ in range(6):
        KV = K @ V
        V = (0.25 * V) @ (13.0 * I - KV @ (15.0 * I - KV @ (7.0 * I - KV)))
    x = (k1 @ V) @ (k3 @ v)
    pad = dker // 2
    vp = jnp.pad(v, ((0, 0), (0, 0), (pad, pad), (0, 0)))
    conv = sum(mod.Wconv[:, i][None, :, None, None] * vp[:, :, i:i + T, :]
               for i in range(dker))
    x = x + conv
    x = x.transpose(0, 2, 1, 3).reshape(B, T, h * dk)
    return lin(x, mod.Wo, mod.bo)


if __name__ == "__main__":
    root = jax.random.PRNGKey(0)
    kp, kq, kk, kv = jax.random.split(root, 4)

    n_head, n_feat, n_landmarks, n_attn, d_kernel = 2, 32, 4, 32, 3
    B, T = 2, 8

    mod = NystromAttentionPallas(n_head, n_feat, n_landmarks, n_attn, d_kernel, kp)
    query = jax.random.normal(kq, (B, T, n_feat), jnp.float32)
    key_t = jax.random.normal(kk, (B, T, n_feat), jnp.float32)
    value = jax.random.normal(kv, (B, T, n_feat), jnp.float32)
    mask = jnp.ones((B, 1, T), jnp.bool_)   # unused, mirrors PyTorch signature

    # 1) Exact parity (f32 MXU operands, exact divides) -- cross-attention path.
    out_f32 = jax.block_until_ready(
        mod(query, key_t, value, mask, compute_dtype=jnp.float32))
    ref = reference_forward(mod, query, key_t, value)
    assert out_f32.shape == (B, T, n_feat)
    assert bool(jnp.all(jnp.isfinite(out_f32)))
    assert bool(jnp.allclose(out_f32, ref, atol=5e-2, rtol=5e-2))

    # 2) Exact parity -- fused single-matmul self-attention projection path.
    out_self = jax.block_until_ready(
        mod(query, query, query, mask, compute_dtype=jnp.float32))
    ref_self = reference_forward(mod, query, query, query)
    assert bool(jnp.all(jnp.isfinite(out_self)))
    assert bool(jnp.allclose(out_self, ref_self, atol=5e-2, rtol=5e-2))

    # 3) Production path: bf16 MXU operands + f32 accumulation, approx EUP
    #    reciprocals, bf16 q/k/v through HBM.  The tiny L=4 Newton-Schulz
    #    pseudo-inverse in this demo config amplifies low-precision
    #    perturbations, so per the reviewer's caveat this path is smoke-tested
    #    (compile/run/finite) rather than asserted to tight parity.
    out_bf16 = jax.block_until_ready(mod(query, query, query, mask))
    assert out_bf16.shape == (B, T, n_feat)
    assert bool(jnp.all(jnp.isfinite(out_bf16)))

    print("KERNEL_OK")
</pallas_src>

<mosaic_0001>
module attributes {stable_mosaic.version = 11 : i64} {
  func.func @_qkv_cross_kernel(%arg0: i32, %arg1: i32, %arg2: memref<1x8x32xf32, #tpu.memory_space<vmem>>, %arg3: memref<1x8x32xf32, #tpu.memory_space<vmem>>, %arg4: memref<1x8x32xf32, #tpu.memory_space<vmem>>, %arg5: memref<3x32x32xf32, #tpu.memory_space<vmem>>, %arg6: memref<3x1x32xf32, #tpu.memory_space<vmem>>, %arg7: memref<1x8x32xf32, #tpu.memory_space<vmem>>, %arg8: memref<1x8x32xf32, #tpu.memory_space<vmem>>, %arg9: memref<1x8x32xf32, #tpu.memory_space<vmem>>) attributes {dimension_semantics = [#tpu.dimension_semantics<parallel>, #tpu.dimension_semantics<parallel>], iteration_bounds = array<i64: 2, 1>, scalar_prefetch = 0 : i64, scratch_operands = 0 : i64, tpu.core_type = #tpu.core_type<tc>, window_params = [{transform_indices = @transform_0, window_bounds = array<i64: 1, 8, 32>}, {transform_indices = @transform_1, window_bounds = array<i64: 1, 8, 32>}, {transform_indices = @transform_2, window_bounds = array<i64: 1, 8, 32>}, {pipeline_mode = #tpu.pipeline_mode<synchronous>, transform_indices = @transform_3, window_bounds = array<i64: 3, 32, 32>}, {pipeline_mode = #tpu.pipeline_mode<synchronous>, transform_indices = @transform_4, window_bounds = array<i64: 3, 1, 32>}, {transform_indices = @transform_5, window_bounds = array<i64: 1, 8, 32>}, {transform_indices = @transform_6, window_bounds = array<i64: 1, 8, 32>}, {transform_indices = @transform_7, window_bounds = array<i64: 1, 8, 32>}]} {
    %c0 = arith.constant 0 : index
    %c0_0 = arith.constant 0 : index
    %c0_1 = arith.constant 0 : index
    %0 = vector.load %arg2[%c0, %c0_0, %c0_1] : memref<1x8x32xf32, #tpu.memory_space<vmem>>, vector<1x8x32xf32>
    %1 = vector.shape_cast %0 : vector<1x8x32xf32> to vector<8x32xf32>
    %c0_2 = arith.constant 0 : index
    %c0_3 = arith.constant 0 : index
    %c0_4 = arith.constant 0 : index
    %2 = vector.load %arg5[%c0_2, %c0_3, %c0_4] : memref<3x32x32xf32, #tpu.memory_space<vmem>>, vector<1x32x32xf32>
    %3 = vector.shape_cast %2 : vector<1x32x32xf32> to vector<32x32xf32>
    %cst = arith.constant dense<0.000000e+00> : vector<8x32xf32>
    %4 = tpu.matmul %1, %3, %cst {dimension_numbers = #tpu.dot_dimension_numbers<[1], [0], [0], [1], [0, 0, 1, 1], [], []>} : vector<8x32xf32>, vector<32x32xf32>, vector<8x32xf32> -> vector<8x32xf32>
    %c0_5 = arith.constant 0 : index
    %c0_6 = arith.constant 0 : index
    %c0_7 = arith.constant 0 : index
    %5 = vector.load %arg6[%c0_5, %c0_6, %c0_7] : memref<3x1x32xf32, #tpu.memory_space<vmem>>, vector<1x1x32xf32>
    %6 = vector.shape_cast %5 : vector<1x1x32xf32> to vector<1x32xf32>
    %7 = vector.broadcast %6 : vector<1x32xf32> to vector<8x32xf32>
    %8 = arith.addf %4, %7 : vector<8x32xf32>
    %c0_8 = arith.constant 0 : index
    %c0_9 = arith.constant 0 : index
    %c0_10 = arith.constant 0 : index
    %9 = vector.load %arg7[%c0_8, %c0_9, %c0_10] : memref<1x8x32xf32, #tpu.memory_space<vmem>>, vector<1x8x32xf32>
    %10 = vector.shape_cast %9 : vector<1x8x32xf32> to vector<8x32xf32>
    %11 = vector.shape_cast %8 : vector<8x32xf32> to vector<1x8x32xf32>
    tpu.vector_store %arg7[%c0_8, %c0_9, %c0_10], %11 {strides = array<i32>} : memref<1x8x32xf32, #tpu.memory_space<vmem>>, vector<1x8x32xf32>,
    %c0_11 = arith.constant 0 : index
    %c0_12 = arith.constant 0 : index
    %c0_13 = arith.constant 0 : index
    %12 = vector.load %arg3[%c0_11, %c0_12, %c0_13] : memref<1x8x32xf32, #tpu.memory_space<vmem>>, vector<1x8x32xf32>
    %13 = vector.shape_cast %12 : vector<1x8x32xf32> to vector<8x32xf32>
    %c1 = arith.constant 1 : index
    %c0_14 = arith.constant 0 : index
    %c0_15 = arith.constant 0 : index
    %14 = vector.load %arg5[%c1, %c0_14, %c0_15] : memref<3x32x32xf32, #tpu.memory_space<vmem>>, vector<1x32x32xf32>
    %15 = vector.shape_cast %14 : vector<1x32x32xf32> to vector<32x32xf32>
    %cst_16 = arith.constant dense<0.000000e+00> : vector<8x32xf32>
    %16 = tpu.matmul %13, %15, %cst_16 {dimension_numbers = #tpu.dot_dimension_numbers<[1], [0], [0], [1], [0, 0, 1, 1], [], []>} : vector<8x32xf32>, vector<32x32xf32>, vector<8x32xf32> -> vector<8x32xf32>
    %c1_17 = arith.constant 1 : index
    %c0_18 = arith.constant 0 : index
    %c0_19 = arith.constant 0 : index
    %17 = vector.load %arg6[%c1_17, %c0_18, %c0_19] : memref<3x1x32xf32, #tpu.memory_space<vmem>>, vector<1x1x32xf32>
    %18 = vector.shape_cast %17 : vector<1x1x32xf32> to vector<1x32xf32>
    %19 = vector.broadcast %18 : vector<1x32xf32> to vector<8x32xf32>
    %20 = arith.addf %16, %19 : vector<8x32xf32>
    %c0_20 = arith.constant 0 : index
    %c0_21 = arith.constant 0 : index
    %c0_22 = arith.constant 0 : index
    %21 = vector.load %arg8[%c0_20, %c0_21, %c0_22] : memref<1x8x32xf32, #tpu.memory_space<vmem>>, vector<1x8x32xf32>
    %22 = vector.shape_cast %21 : vector<1x8x32xf32> to vector<8x32xf32>
    %23 = vector.shape_cast %20 : vector<8x32xf32> to vector<1x8x32xf32>
    tpu.vector_store %arg8[%c0_20, %c0_21, %c0_22], %23 {strides = array<i32>} : memref<1x8x32xf32, #tpu.memory_space<vmem>>, vector<1x8x32xf32>,
    %c0_23 = arith.constant 0 : index
    %c0_24 = arith.constant 0 : index
    %c0_25 = arith.constant 0 : index
    %24 = vector.load %arg4[%c0_23, %c0_24, %c0_25] : memref<1x8x32xf32, #tpu.memory_space<vmem>>, vector<1x8x32xf32>
    %25 = vector.shape_cast %24 : vector<1x8x32xf32> to vector<8x32xf32>
    %c2 = arith.constant 2 : index
    %c0_26 = arith.constant 0 : index
    %c0_27 = arith.constant 0 : index
    %26 = vector.load %arg5[%c2, %c0_26, %c0_27] : memref<3x32x32xf32, #tpu.memory_space<vmem>>, vector<1x32x32xf32>
    %27 = vector.shape_cast %26 : vector<1x32x32xf32> to vector<32x32xf32>
    %cst_28 = arith.constant dense<0.000000e+00> : vector<8x32xf32>
    %28 = tpu.matmul %25, %27, %cst_28 {dimension_numbers = #tpu.dot_dimension_numbers<[1], [0], [0], [1], [0, 0, 1, 1], [], []>} : vector<8x32xf32>, vector<32x32xf32>, vector<8x32xf32> -> vector<8x32xf32>
    %c2_29 = arith.constant 2 : index
    %c0_30 = arith.constant 0 : index
    %c0_31 = arith.constant 0 : index
    %29 = vector.load %arg6[%c2_29, %c0_30, %c0_31] : memref<3x1x32xf32, #tpu.memory_space<vmem>>, vector<1x1x32xf32>
    %30 = vector.shape_cast %29 : vector<1x1x32xf32> to vector<1x32xf32>
    %31 = vector.broadcast %30 : vector<1x32xf32> to vector<8x32xf32>
    %32 = arith.addf %28, %31 : vector<8x32xf32>
    %c0_32 = arith.constant 0 : index
    %c0_33 = arith.constant 0 : index
    %c0_34 = arith.constant 0 : index
    %33 = vector.load %arg9[%c0_32, %c0_33, %c0_34] : memref<1x8x32xf32, #tpu.memory_space<vmem>>, vector<1x8x32xf32>
    %34 = vector.shape_cast %33 : vector<1x8x32xf32> to vector<8x32xf32>
    %35 = vector.shape_cast %32 : vector<8x32xf32> to vector<1x8x32xf32>
    tpu.vector_store %arg9[%c0_32, %c0_33, %c0_34], %35 {strides = array<i32>} : memref<1x8x32xf32, #tpu.memory_space<vmem>>, vector<1x8x32xf32>,
    return
  }
  func.func @transform_0(%arg0: i32, %arg1: i32) -> (i32, i32, i32) {
    %c0_i32 = arith.constant 0 : i32
    %c0_i32_0 = arith.constant 0 : i32
    return %arg0, %arg1, %c0_i32 : i32, i32, i32
  }
  func.func @transform_1(%arg0: i32, %arg1: i32) -> (i32, i32, i32) {
    %c0_i32 = arith.constant 0 : i32
    %c0_i32_0 = arith.constant 0 : i32
    return %arg0, %arg1, %c0_i32 : i32, i32, i32
  }
  func.func @transform_2(%arg0: i32, %arg1: i32) -> (i32, i32, i32) {
    %c0_i32 = arith.constant 0 : i32
    %c0_i32_0 = arith.constant 0 : i32
    return %arg0, %arg1, %c0_i32 : i32, i32, i32
  }
  func.func @transform_3(%arg0: i32, %arg1: i32) -> (i32, i32, i32) {
    %c0_i32 = arith.constant 0 : i32
    %c0_i32_0 = arith.constant 0 : i32
    %c0_i32_1 = arith.constant 0 : i32
    %c0_i32_2 = arith.constant 0 : i32
    return %c0_i32, %c0_i32_0, %c0_i32_1 : i32, i32, i32
  }
  func.func @transform_4(%arg0: i32, %arg1: i32) -> (i32, i32, i32) {
    %c0_i32 = arith.constant 0 : i32
    %c0_i32_0 = arith.constant 0 : i32
    %c0_i32_1 = arith.constant 0 : i32
    %c0_i32_2 = arith.constant 0 : i32
    return %c0_i32, %c0_i32_0, %c0_i32_1 : i32, i32, i32
  }
  func.func @transform_5(%arg0: i32, %arg1: i32) -> (i32, i32, i32) {
    %c0_i32 = arith.constant 0 : i32
    %c0_i32_0 = arith.constant 0 : i32
    return %arg0, %arg1, %c0_i32 : i32, i32, i32
  }
  func.func @transform_6(%arg0: i32, %arg1: i32) -> (i32, i32, i32) {
    %c0_i32 = arith.constant 0 : i32
    %c0_i32_0 = arith.constant 0 : i32
    return %arg0, %arg1, %c0_i32 : i32, i32, i32
  }
  func.func @transform_7(%arg0: i32, %arg1: i32) -> (i32, i32, i32) {
    %c0_i32 = arith.constant 0 : i32
    %c0_i32_0 = arith.constant 0 : i32
    return %arg0, %arg1, %c0_i32 : i32, i32, i32
  }
}

</mosaic_0001>

<bundles_post_ra>
// kernel: tpu_custom_call.1
= control target key start
LH: loop header
LB: loop body
LE: loop exit
PB: predicated region body
PF: predicated region fallthrough
CT: control target
= control target key end

     0   :  { %s1755_s0 = inlined_call_operand.hbm [shape: f32[2,8,32], index: 0, kind: input, shape index: {}]   ;;  %s1756_s1 = inlined_call_operand.hbm [shape: f32[2,8,32], index: 1, kind: input, shape index: {}]   ;;  %s1757_s2 = inlined_call_operand.hbm [shape: f32[2,8,32], index: 2, kind: input, shape index: {}]   ;;  %s1758_s3 = inlined_call_operand.hbm [shape: f32[3,32,32], index: 3, kind: input, shape index: {}]   ;;  %s1759_s4 = inlined_call_operand.vmem [shape: f32[3,1,32], index: 4, kind: input, shape index: {}]   ;;  %s1760_s5 = inlined_call_operand.hbm [shape: f32[2,8,32], index: 5, kind: output, shape index: {0}]   ;;  %s1761_s6 = inlined_call_operand.hbm [shape: f32[2,8,32], index: 6, kind: output, shape index: {1}]   ;;  %s1762_s7 = inlined_call_operand.hbm [shape: f32[2,8,32], index: 7, kind: output, shape index: {2}]  }
   0x1   :  { %1773 = sst [smem:[#allocation25_spill]] %s1756_s1 }
   0x2   :  { %13 = vsyncpa [#allocation3], 0 }
   0x3   :  { %15 = vsyncpa [#allocation3 + $0x1], 0 }
   0x4   :  { %16 = vsyncpa [#allocation6], 0 }
   0x5   :  { %18 = vsyncpa [#allocation6 + $0x1], 0 }
   0x6   :  { %19 = vsyncpa [#allocation9], 0 }
   0x7   :  { %20 = vsyncpa [#allocation4], 0 }
   0x8   :  { %22 = vsyncpa [#allocation4 + $0x1], 0 }
   0x9   :  { %23 = vsyncpa [#allocation12], 0 }
   0xa   :  { %25 = vsyncpa [#allocation12 + $0x1], 0  ;;  %s1426_s24 = smov 0   ;;  %s1428_s25 = smov 0  }
   0xb   :  { %s1430_s26 = smov 0   ;;  %s1432_s27 = smov 0  }
   0xc   :  { %s1434_s28 = smov 0   ;;  %s1436_s29 = smov 0  }
   0xd LB: > { %1774 = sst [smem:[#allocation19_spill]] %s1353_s24  ;;  %s43_s30 = sadd.s32 1, %s1369_s28  ;;  %s1373_s29 = sphi %s1436_s29, %s31_s29   ;;  %s1369_s28 = sphi %s1434_s28, %s1800_s28   ;;  %s1365_s27 = sphi %s1432_s27, %s1799_s27   ;;  %s1361_s26 = sphi %s1430_s26, %s1803_s26   ;;  %s1357_s25 = sphi %s1428_s25, %s1802_s25   ;;  %s1353_s24 = sphi %s1426_s24, %s1801_s24  }
   0xe   : > { %1775 = sst [smem:[#allocation20_spill]] %s1369_s28  ;;  %s52_s8 = sadd.s32 1, %s1361_s26 }
   0xf   : > { %1776 = sst [smem:[#allocation21_spill]] %s1373_s29  ;;  %p45_p0 = scmp.ge.s32.totalorder %s43_s30, 2 }
  0x10   : > { %p59_p1 = scmp.ne.s32.totalorder %s1361_s26, %s1357_s25  ;;  %p60_p2 = scmp.eq.s32.totalorder %s1373_s29, 0 }
  0x11   : > { %s1805_s30 = smov (%p45_p0, %s43_s30), 0  ;;  %p1063_p5 = scmp.lt.s32.totalorder %s1373_s29, 2 }
  0x12   : > { %1777 = sst [smem:[#allocation22_spill]] %s1805_s30  ;;  %p61_p4 = por %p60_p2, %p59_p1 }
  0x13   : > { %s47_s9 = ssub.s32 %s1369_s28, %s1805_s30  ;;  %s1764_s10 = sand.u32 1, %s1361_s26  }
  0x14   : > { %p50_p6 = scmp.eq.s32.totalorder %s47_s9, 0  ;;  %s1473_s11 = sshll.u32 %s1764_s10, 3 }
  0x15   : > { %s1476_s12 = sshll.u32 %s1369_s28, 7  ;;  %p1478_p7 = pnand %p1063_p5, %p61_p4 }
  0x16   : > { %s1483_s14 = scalar_select %p50_p6, %s1361_s26, %s52_s8  }
  0x17   : > { %s306_s15 = sand.u32 1, %s1373_s29   ;;  %s1780_s1 = sld [smem:[#allocation25_spill]] }
  0x18   : > { %1779 = sst [smem:[#allocation23_spill]] %s1483_s14  ;;  %s310_s19 = scalar_lea.vmem [#allocation5], %s1473_s11 }
  0x19   : > { %s318_s20 = sshll.u32 %s310_s19, 4  ;;  %s1491_s21 = scalar_lea.sflag [#allocation6], %s306_s15  ;;  %s319_s20 = int_to_ptr.vmem [resolvable:$true] %s318_s20 }
  0x1a   : > { %p1767_p8 = pneg %p1478_p7  ;;  %s1132_s22 = scalar_lea.vmem %s319_s20, 128 }
  0x1b   : > { %p1133_p9 = scmp.ne.s32.totalorder %s319_s20, %s1132_s22  ;;  %s1375_s23 = smov [#allocation5]  }
  0x1c   : > { %s1137_s8 = sshll.u32 %s1375_s23, 4  ;;  %s1138_s8 = int_to_ptr.vmem [resolvable:$false] %s1137_s8 }
  0x1d   : > { %s316_s18 = scalar_lea.hbm %s1780_s1, %s1476_s12  ;;  %p1135_p10 = pnand %p1133_p9, %p1767_p8 }
  0x1e   : > { %s1139_s9 = scalar_lea.vmem %s1138_s8, 256  ;;  %p1140_p12 = scmp.lt.s32.totalorder %s319_s20, %s1138_s8 }
  0x1f   : > { %p1136_p11 = pneg %p1135_p10  ;;  %p1141_p13 = scmp.lt.s32.totalorder %s1139_s9, %s1132_s22 }
  0x21   : > { %p1142_p0 = por %p1141_p13, %p1140_p12 }
  0x23   : > { %p1143_p2 = pnand %p1142_p0, %p1136_p11 }
  0x25   : > { %1146 = shalt.err (!%p1143_p2)
}
  0x26   : > { %1048 = dma.hbm_to_vmem [thread:$0]  (!%p1478_p7), %s316_s18, 128, %s319_s20, %s1491_s21  }
  0x27   : > { %s1502_s15 = sadd.s32 4294967295, %s1373_s29   ;;  %s1763_s16 = sadd.s32 4294967294, %s1373_s29  }
  0x28   : > { %p65_p4 = scmp.ne.s32.totalorder %s1357_s25, %s1353_s24  ;;  %p1766_p5 = scmp.eq.s32.totalorder %s1502_s15, 0 }
  0x29   : > { %p189_p6 = scmp.eq.s32.totalorder %s1502_s15, 1  ;;  %p195_p9 = scmp.eq.s32.totalorder %s1763_s16, 1 }
  0x2a   : > { %p941_p10 = scmp.ge.s32.totalorder %s1373_s29, 1  ;;  %p1514_p11 = por %p1766_p5, %p65_p4 }
  0x2b   : > { %p1521_p12 = por %p189_p6, %p59_p1  ;;  %p1525_p13 = por %p195_p9, %p65_p4 }
  0x2c   : > { %p258_p0 = scmp.lt.s32.totalorder %s1373_s29, 3  ;;  %s1376_s22 = smov [#allocation8]  }
  0x2d   : > { %s1783_s19 = scalar_select %p1525_p13, 1, 0 }
  0x2e   : > { %p1530_p2 = pnand %p941_p10, %p258_p0  ;;  %s270_s23 = sshll.u32 %s1376_s22, 4  ;;  %s271_s23 = int_to_ptr.vmem [resolvable:$true] %s270_s23 }
  0x2f   : > { %1784 = sst [smem:[#allocation24_spill]] %s1783_s19  ;;  %s291_s1 = scalar_lea.vmem [#allocation2], %s1473_s11 }
  0x30   : > { %p1038_p3 = pneg %p1530_p2  ;;  %s299_s30 = sshll.u32 %s291_s1, 4  ;;  %s1547_s30 = int_to_ptr.vmem [resolvable:$true] %s299_s30 }
  0x31   : > { %s1158_s22 = scalar_lea.vmem %s271_s23, 1536  ;;  %p1166_p0 = scmp.lt.s32.totalorder %s271_s23, %s271_s23 }
  0x32   : > { %p1538_p1 = pnand %p1038_p3, %p1766_p5  ;;  %p1159_p6 = scmp.ne.s32.totalorder %s271_s23, %s1158_s22 }
  0x33   : > { %p1167_p3 = scmp.lt.s32.totalorder %s1158_s22, %s1158_s22 }
  0x34   : > { %p1149_p4 = pneg %p1538_p1 }
  0x35   : > { %p1168_p5 = por %p1167_p3, %p1166_p0 }
  0x36   : > { %p1161_p9 = pnand %p1159_p6, %p1149_p4 }
  0x38   : > { %p1162_p10 = pneg %p1161_p9 }
  0x3a   : > { %p1169_p8 = pnand %p1168_p5, %p1162_p10 }
  0x3c   : > { %1172 = shalt.err (!%p1169_p8)
}
  0x3d   : > { %s1377_s28 = smov 128   ;;  %s1378_s1 = smov 8  }
  0x3e   : > { %1041 = dma.hbm_to_vmem [thread:$0]  (!%p1538_p1), %s1758_s3, 1536, %s271_s23, [#allocation9], %s1377_s28, %s1377_s28, %s1378_s1  }
  0x3f   : > { %s1787_s10 = sand.u32 1, %s1361_s26   ;;  %s1186_s29 = scalar_lea.vmem %s1547_s30, 128 }
  0x40   : > { %s288_s14 = scalar_lea.sflag [#allocation3], %s1787_s10  ;;  %p1187_p4 = scmp.ne.s32.totalorder %s1547_s30, %s1186_s29 }
  0x41   : > { %p1788_p5 = pneg %p1478_p7  ;;  %s1379_s22 = smov [#allocation2]  }
  0x42   : > { %s1191_s19 = sshll.u32 %s1379_s22, 4  ;;  %s1192_s19 = int_to_ptr.vmem [resolvable:$false] %s1191_s19 }
  0x43   : > { %p1189_p8 = pnand %p1187_p4, %p1788_p5  ;;  %s1193_s24 = scalar_lea.vmem %s1192_s19, 256 }
  0x44   : > { %p1194_p9 = scmp.lt.s32.totalorder %s1547_s30, %s1192_s19  ;;  %p1195_p10 = scmp.lt.s32.totalorder %s1193_s24, %s1186_s29 }
  0x45   : > { %p1190_p6 = pneg %p1189_p8 }
  0x46   : > { %p1196_p0 = por %p1195_p10, %p1194_p9 }
  0x48   : > { %p1197_p3 = pnand %p1196_p0, %p1190_p6 }
  0x4a   : > { %1200 = shalt.err (!%p1197_p3)
}
  0x4b   : > { %s1789_s23 = scalar_lea.hbm %s1755_s0, %s1476_s12  ;;  %s335_s19 = scalar_lea.hbm %s1757_s2, %s1476_s12 }
  0x4c   : > { %1045 = dma.hbm_to_vmem [thread:$0]  (!%p1478_p7), %s1789_s23, 128, %s1547_s30, %s288_s14  }
  0x4d   : > { %s329_s24 = scalar_lea.vmem [#allocation7], %s1473_s11  ;;  %p1790_p4 = pmov %p1788_p5 }
  0x4e   : > { %s337_s29 = sshll.u32 %s329_s24, 4  ;;  %s1380_s9 = smov [#allocation7]   ;;  %s338_s29 = int_to_ptr.vmem [resolvable:$true] %s337_s29 }
  0x4f   : > { %s1214_s16 = scalar_lea.vmem %s338_s29, 128  ;;  %s1219_s22 = sshll.u32 %s1380_s9, 4  ;;  %s1220_s22 = int_to_ptr.vmem [resolvable:$false] %s1219_s22 }
  0x50   : > { %p1215_p1 = scmp.ne.s32.totalorder %s338_s29, %s1214_s16  ;;  %s1221_s28 = scalar_lea.vmem %s1220_s22, 256 }
  0x51   : > { %p1222_p6 = scmp.lt.s32.totalorder %s338_s29, %s1220_s22  ;;  %p1223_p9 = scmp.lt.s32.totalorder %s1221_s28, %s1214_s16 }
  0x52   : > { %p1217_p5 = pnand %p1215_p1, %p1790_p4 }
  0x53   : > { %p1224_p10 = por %p1223_p9, %p1222_p6 }
  0x54   : > { %p1218_p8 = pneg %p1217_p5 }
  0x56   : > { %p1225_p0 = pnand %p1224_p10, %p1218_p8 }
  0x58   : > { %1228 = shalt.err (!%p1225_p0)
}
  0x59   : > { %1051 = dma.hbm_to_vmem [thread:$0]  (!%p1478_p7), %s335_s19, 128, %s338_s29, %s1491_s21  }
  0x5a   : > { %346 = sbr.rel (%p1530_p2) target bundleno = 365 (0x16d), region = 40  ;;  %s1586_s30 = sand.u32 (!%p1530_p2), 1, %s1357_s25  }
  0x5b   : > { %s1589_s11 = sshll.u32 (!%p1530_p2), %s1586_s30, 3  ;;  %s349_s12 = scalar_lea.sflag (!%p1530_p2), [#allocation3], %s1586_s30 }
  0x5c   : > { %s352_s14 = scalar_lea.vmem (!%p1530_p2), [#allocation2], %s1589_s11 }
  0x5f   : > { %1332 = dma.done.wait (%p1514_p11), %s349_s12, 128  }
  0x60   : > { %1334 = vsyncadd (%p1514_p11), %s349_s12, 4294967168  ;;  %s357_s13 = sand.u32 1, %s1502_s15   ;;  %s361_s20 = scalar_lea.vmem [#allocation5], %s1589_s11 }
  0x61   : > { %s358_s21 = scalar_lea.sflag [#allocation6], %s357_s13 }
  0x62   : > { %1336 = dma.done.wait (%p1514_p11), %s358_s21, 256  }
  0x63   : > { %1338 = vsyncadd (%p1514_p11), %s358_s21, 4294967040  ;;  %s370_s10 = scalar_lea.vmem [#allocation7], %s1589_s11  ;;  %p1791_p7 = scmp.eq.s32.totalorder %s1502_s15, 0 }
  0x65   : > { %1340 = dma.done.wait (%p1791_p7), [#allocation9], 1536   ;;  %p1792_p2 = pmov %p1791_p7 }
  0x66   : > { %v1381_v0 = vmov 0.0   ;;  %vm1382_vm0 = vmmov 0   ;;  %v429_v1 = vld [vmem:[#allocation8 + $0x18] sm:$0xff]  ;;  %v428_v2 = vld [vmem:[#allocation8 + $0x10] sm:$0xff]  ;;  %v427_v4 = vld [vmem:[#allocation8 + $0x8] sm:$0xff]  ;;  %vm437_vm1 = vcmask 261120  }
  0x67   : > { %1342 = vsyncadd (%p1792_p2), [#allocation9], 4294965760  ;;  %989 = vmatprep.subr.mxu0 %v1381_v0  ;;  %1000 = vmatprep.subr.mxu1 %v1381_v0  ;;  %v517_v3 = vld [vmem:[#allocation8 + $0x38] sm:$0xff]  ;;  %v516_v5 = vld [vmem:[#allocation8 + $0x30] sm:$0xff]  ;;  %s1626_s8 = sshll.u32 %s1365_s27, 7  ;;  %s410_s1 = scalar_lea.vmem [#allocation10], %s1589_s11 }
  0x68   : > { %997 = vmatprep.mubr.msk.f32.mxu0 %vm1382_vm0, %v1381_v0  ;;  %1008 = vmatprep.mubr.msk.f32.mxu1 %vm1382_vm0, %v1381_v0  ;;  %v515_v6 = vld [vmem:[#allocation8 + $0x28] sm:$0xff]  ;;  %v426_v7 = vld [vmem:[#allocation8] sm:$0xff]  ;;  %v425_v8 = vld [vmem:[%s352_s14] sm:$0xff]  ;;  %s713_s19 = sshll.u32 %s410_s1, 4  ;;  %s417_s16 = scalar_lea.vmem [#allocation11], %s1589_s11  ;;  %s1641_s19 = int_to_ptr.vmem [resolvable:$true] %s713_s19 }
  0x69   : > { %990 = vmatpush3.msra.mxu0 %v429_v1  ;;  %1001 = vmatpush3.msra.mxu1 %v517_v3  ;;  %v605_v9 = vld [vmem:[#allocation8 + $0x58] sm:$0xff]  ;;  %v514_v10 = vld [vmem:[#allocation8 + $0x20] sm:$0xff]  ;;  %v604_v12 = vld [vmem:[#allocation8 + $0x50] sm:$0xff]  ;;  %s727_s9 = sshll.u32 %s417_s16, 4  ;;  %s1639_s27 = scalar_lea.hbm %s1760_s5, %s1626_s8  ;;  %s1649_s9 = int_to_ptr.vmem [resolvable:$true] %s727_s9 }
  0x6a   : > { %991 = vmatprep.subr.mxu0 %v1381_v0  ;;  %1002 = vmatprep.subr.mxu1 %v1381_v0  ;;  %v512_v11 = vld [vmem:[%s361_s20] sm:$0xff]  ;;  %v600_v15 = vld [vmem:[%s370_s10] sm:$0xff]  ;;  %s1647_s21 = scalar_lea.hbm %s1761_s6, %s1626_s8  ;;  %s689_s20 = scalar_lea.sflag [#allocation4], %s1586_s30 }
  0x6b   : > { %992 = vmatpush3.msra.mxu0 %v428_v2  ;;  %1003 = vmatpush3.msra.mxu1 %v516_v5  ;;  %v603_v13 = vld [vmem:[#allocation8 + $0x48] sm:$0xff]  ;;  %v602_v14 = vld [vmem:[#allocation8 + $0x40] sm:$0xff]  ;;  %v958_v16 = vld [vmem:[%s1759_s4] ss:$0 sm:$0xff]  ;;  %s1229_s10 = scalar_lea.vmem %s1641_s19, 128  ;;  %s1383_s17 = smov [#allocation10]  }
  0x6c   : > { %993 = vmatprep.subr.mxu0 %v1381_v0  ;;  %1004 = vmatprep.subr.mxu1 %v1381_v0  ;;  %v961_v18 = vld [vmem:[%s1759_s4 + $0x1] ss:$0 sm:$0xff]  ;;  %p1230_p11 = scmp.ne.s32.totalorder %s1641_s19, %s1229_s10  ;;  %s1233_s23 = sshll.u32 %s1383_s17, 4  ;;  %s1234_s23 = int_to_ptr.vmem [resolvable:$false] %s1233_s23 }
  0x6d   : > { %994 = vmatpush3.msra.mxu0 %v427_v4  ;;  %1005 = vmatpush3.msra.mxu1 %v515_v6  ;;  %s1235_s24 = scalar_lea.vmem %s1234_s23, 256  ;;  %p1236_p4 = scmp.lt.s32.totalorder %s1641_s19, %s1234_s23 }
  0x6e   : > { %995 = vmatprep.subr.mxu0 %v1381_v0  ;;  %1006 = vmatprep.subr.mxu1 %v1381_v0  ;;  %p1231_p3 = pnand %p1230_p11, %p1521_p12  ;;  %p1237_p5 = scmp.lt.s32.totalorder %s1235_s24, %s1229_s10 }
  0x6f   : > { %996 = vmatpush3.msra.mxu0 %v426_v7  ;;  %1007 = vmatpush3.msra.mxu1 %v514_v10 }
  0x70   : > { %998 = vmatmul.mubr.msk.f32.vlgmr.msra.gmra.mxu0 %vm437_vm1, %v425_v8  ;;  %1011 = vmatprep.subr.mxu0 %v1381_v0  ;;  %p1232_p1 = pneg %p1231_p3  ;;  %p1238_p8 = por %p1237_p5, %p1236_p4 }
  0x71   : > { %1012 = vmatpush3.msra.mxu0 %v605_v9  ;;  %1009 = vmatmul.mubr.msk.f32.vlgmr.msra.gmra.mxu1 %vm437_vm1, %v512_v11 }
  0x72   : > { %1013 = vmatprep.subr.mxu0 %v1381_v0  ;;  %1019 = vmatprep.mubr.msk.f32.mxu0 %vm1382_vm0, %v1381_v0  ;;  %p1239_p6 = pnand %p1238_p8, %p1232_p1 }
  0x73   : > { %1014 = vmatpush3.msra.mxu0 %v604_v12 }
  0x74   : > { %1015 = vmatprep.subr.mxu0 %v1381_v0 }
  0x75   : > { %1016 = vmatpush3.msra.mxu0 %v603_v13 }
  0x76   : > { %1017 = vmatprep.subr.mxu0 %v1381_v0 }
  0x77   : > { %1018 = vmatpush3.msra.mxu0 %v602_v14 }
  0x78   : > { %1020 = vmatmul.mubr.msk.f32.vlgmr.msra.gmra.mxu0 %vm437_vm1, %v600_v15 }
 0x130   : > { %v507_v17 = vpop.f32.mrf.mxu0 }
 0x131   : > { %v508_v19 = vadd.f32 %v958_v16, %v507_v17  ;;  %v595_v21 = vpop.f32.mrf.mxu1 }
 0x132   : > { %v999_v20 = vpop.f32.mrf.mxu0  ;;  %v596_v22 = vadd.f32 %v961_v18, %v595_v21 }
 0x133   : > { %511 = vst.msk [vmem:[%s410_s1] sm:$0xff] %vm437_vm1, %v508_v19  ;;  %v1010_v23 = vpop.f32.mrf.mxu1 }
 0x134   : > { %1242 = shalt.err (!%p1239_p6)
}
 0x135   : > { %s1243_s1 = scalar_lea.hbm %s1639_s27, 128  ;;  %s1247_s22 = scalar_lea.hbm %s1760_s5, 256 }
 0x136   : > { %p1244_p9 = scmp.ne.s32.totalorder %s1639_s27, %s1243_s1  ;;  %p1248_p7 = scmp.lt.s32.totalorder %s1639_s27, %s1760_s5 }
 0x137   : > { %p1249_p2 = scmp.lt.s32.totalorder %s1247_s22, %s1243_s1 }
 0x138   : > { %p1245_p10 = pnand %p1244_p9, %p1521_p12 }
 0x139   : > { %p1250_p11 = por %p1249_p2, %p1248_p7 }
 0x13a   : > { %p1246_p0 = pneg %p1245_p10 }
 0x13c   : > { %p1251_p3 = pnand %p1250_p11, %p1246_p0 }
 0x13e   : > { %1254 = shalt.err (!%p1251_p3)
}
 0x13f   : > { %1032 = dma.vmem_to_hbm [thread:$0]  (%p1521_p12), %s1641_s19, 128, %s1639_s27, %s689_s20   ;;  %599 = vst.msk [vmem:[%s417_s16] sm:$0xff] %vm437_vm1, %v596_v22  ;;  %v964_v24 = vld [vmem:[%s1759_s4 + $0x2] ss:$0 sm:$0xff] }
 0x140   : > { %s424_s14 = scalar_lea.vmem [#allocation13], %s1589_s11  ;;  %s1686_s24 = scalar_lea.sflag [#allocation12], %s357_s13 }
 0x141   : > { %s1679_s10 = sshll.u32 %s424_s14, 4  ;;  %s1255_s1 = scalar_lea.vmem %s1649_s9, 128  ;;  %s742_s10 = int_to_ptr.vmem [resolvable:$true] %s1679_s10 }
 0x142   : > { %p1256_p1 = scmp.ne.s32.totalorder %s1649_s9, %s1255_s1  ;;  %s1384_s19 = smov [#allocation11]  }
 0x143   : > { %s1259_s27 = sshll.u32 %s1384_s19, 4  ;;  %s1260_s27 = int_to_ptr.vmem [resolvable:$false] %s1259_s27 }
 0x144   : > { %p1257_p4 = pnand %p1256_p1, %p1521_p12  ;;  %s1261_s16 = scalar_lea.vmem %s1260_s27, 256 }
 0x145   : > { %p1262_p8 = scmp.lt.s32.totalorder %s1649_s9, %s1260_s27  ;;  %p1263_p6 = scmp.lt.s32.totalorder %s1261_s16, %s1255_s1 }
 0x146   : > { %p1258_p5 = pneg %p1257_p4 }
 0x147   : > { %p1264_p9 = por %p1263_p6, %p1262_p8 }
 0x149   : > { %p1265_p10 = pnand %p1264_p9, %p1258_p5 }
 0x14b   : > { %1268 = shalt.err (!%p1265_p10)
}
 0x14c   : > { %s1269_s15 = scalar_lea.hbm %s1647_s21, 128  ;;  %s1273_s30 = scalar_lea.hbm %s1761_s6, 256 }
 0x14d   : > { %p1270_p0 = scmp.ne.s32.totalorder %s1647_s21, %s1269_s15  ;;  %p1274_p11 = scmp.lt.s32.totalorder %s1647_s21, %s1761_s6 }
 0x14e   : > { %p1275_p3 = scmp.lt.s32.totalorder %s1273_s30, %s1269_s15 }
 0x14f   : > { %p1271_p7 = pnand %p1270_p0, %p1521_p12 }
 0x150   : > { %p1276_p1 = por %p1275_p3, %p1274_p11 }
 0x151   : > { %p1272_p2 = pneg %p1271_p7 }
 0x153   : > { %p1277_p4 = pnand %p1276_p1, %p1272_p2 }
 0x155   : > { %1280 = shalt.err (!%p1277_p4)
}
 0x156   : > { %1033 = dma.vmem_to_hbm [thread:$0]  (%p1521_p12), %s1649_s9, 128, %s1647_s21, %s1686_s24   ;;  %v683_v25 = vpop.f32.mrf.mxu0 }
 0x157   : > { %v684_v26 = vadd.f32 %v964_v24, %v683_v25  ;;  %s739_s17 = scalar_lea.hbm %s1762_s7, %s1626_s8  ;;  %s1281_s23 = scalar_lea.vmem %s742_s10, 128 }
 0x158   : > { %v1021_v27 = vpop.f32.mrf.mxu0  ;;  %p1282_p5 = scmp.ne.s32.totalorder %s742_s10, %s1281_s23  ;;  %s1385_s1 = smov [#allocation13]  }
 0x159   : > { %687 = vst.msk [vmem:[%s424_s14] sm:$0xff] %vm437_vm1, %v684_v26  ;;  %s1285_s19 = sshll.u32 %s1385_s1, 4  ;;  %s1286_s19 = int_to_ptr.vmem [resolvable:$false] %s1285_s19 }
 0x15a   : > { %p1283_p8 = pnand %p1282_p5, %p1521_p12  ;;  %s1287_s9 = scalar_lea.vmem %s1286_s19, 256 }
 0x15b   : > { %p1288_p9 = scmp.lt.s32.totalorder %s742_s10, %s1286_s19  ;;  %p1289_p10 = scmp.lt.s32.totalorder %s1287_s9, %s1281_s23 }
 0x15c   : > { %p1284_p6 = pneg %p1283_p8 }
 0x15d   : > { %p1290_p0 = por %p1289_p10, %p1288_p9 }
 0x15f   : > { %p1291_p7 = pnand %p1290_p0, %p1284_p6 }
 0x161   : > { %1294 = shalt.err (!%p1291_p7)
}
 0x162   : > { %s1295_s8 = scalar_lea.hbm %s739_s17, 128  ;;  %s1299_s14 = scalar_lea.hbm %s1762_s7, 256 }
 0x163   : > { %p1296_p2 = scmp.ne.s32.totalorder %s739_s17, %s1295_s8  ;;  %p1300_p1 = scmp.lt.s32.totalorder %s739_s17, %s1762_s7 }
 0x164   : > { %p1301_p4 = scmp.lt.s32.totalorder %s1299_s14, %s1295_s8 }
 0x165   : > { %p1297_p11 = pnand %p1296_p2, %p1521_p12 }
 0x166   : > { %p1302_p5 = por %p1301_p4, %p1300_p1 }
 0x167   : > { %p1298_p3 = pneg %p1297_p11 }
 0x169   : > { %p1303_p8 = pnand %p1302_p5, %p1298_p3 }
 0x16b   : > { %1306 = shalt.err (!%p1303_p8)
}
 0x16c   : > { %1034 = dma.vmem_to_hbm [thread:$0]  (%p1521_p12), %s742_s10, 128, %s739_s17, %s1686_s24  }
 0x16d PF: > { %s1793_s15 = sld [smem:[#allocation19_spill]] }
 0x16e   : > { %s1795_s20 = sld [smem:[#allocation21_spill]] }
 0x173   : > { %s753_s30 = sand.u32 1, %s1793_s15  }
 0x174   : > { %p1796_p6 = scmp.ge.s32.totalorder %s1795_s20, 2  ;;  %s754_s29 = scalar_lea.sflag [#allocation4], %s753_s30 }
 0x176   : > { %p1053_p9 = pnand %p1796_p6, %p1525_p13 }
 0x178   : > { %p1054_p10 = pneg %p1053_p9 }
 0x17a   : > { %1344 = dma.done.wait (%p1054_p10), %s754_s29, 128  }
 0x17b   : > { %1346 = vsyncadd (%p1054_p10), %s754_s29, 4294967168  ;;  %s1797_s22 = sadd.s32 4294967294, %s1795_s20  }
 0x17c   : > { %s762_s28 = sand.u32 1, %s1797_s22  }
 0x17d   : > { %s763_s12 = scalar_lea.sflag [#allocation12], %s762_s28 }
 0x17e   : > { %1348 = dma.done.wait (%p1054_p10), %s763_s12, 256  }
 0x17f   : > { %1350 = vsyncadd (%p1054_p10), %s763_s12, 4294967040  ;;  %s31_s29 = sadd.s32 1, %s1795_s20   ;;  %s1798_s18 = sld [smem:[#allocation23_spill]] }
 0x180   : > { %p28_p12 = scmp.ge.s32.totalorder %s31_s29, 4   ;;  %s1799_s27 = sld [smem:[#allocation20_spill]] }
 0x181   : > { %s1800_s28 = sld [smem:[#allocation22_spill]]  ;;  %s1801_s24 = smov %s1357_s25 }
 0x182   : > { %s1802_s25 = smov %s1361_s26  ;;  %30 = sbr.rel (!%p28_p12) target bundleno = 13 (0xd), region = 149 }
 0x185   : > { %s1803_s26 = smov %s1798_s18 }
 0x187   :  { %777 = vsyncpa [#allocation3], 1 }
 0x188   :  { %779 = vsyncpa [#allocation3 + $0x1], 1 }
 0x189   :  { %780 = vsyncpa [#allocation6], 1 }
 0x18a   :  { %782 = vsyncpa [#allocation6 + $0x1], 1 }
 0x18b   :  { %783 = vsyncpa [#allocation9], 1 }
 0x18c   :  { %784 = vsyncpa [#allocation4], 1 }
 0x18d   :  { %786 = vsyncpa [#allocation4 + $0x1], 1 }
 0x18e   :  { %787 = vsyncpa [#allocation12], 1 }
 0x18f   :  { %789 = vsyncpa [#allocation12 + $0x1], 1 }

</bundles_post_ra>
